<compile_context>
chip_gen: v5e
topology: v5e:2x2
jax: 0.10.0
libtpu: 0.0.40
codegen_flags: <defaults>
</compile_context>

<pallas_src>
import numpy as np
import jax
import jax.numpy as jnp
from jax.experimental import pallas as pl
from jax.experimental.pallas import tpu as pltpu

F32 = jnp.float32
VMEM_SPEC = pl.BlockSpec(memory_space=pltpu.MemorySpace.VMEM)

NODE_TYPES = ('user', 'director', 'genre', 'movie')
EDGE_TYPES = (
    ('user', 'rates', 'movie'),
    ('movie', 'rev_rates', 'user'),
    ('movie', 'has_genre', 'genre'),
    ('genre', 'rev_has_genre', 'movie'),
    ('director', 'directs', 'movie'),
    ('movie', 'rev_directs', 'director'),
)
# destination node type -> ordered incoming edge types (to_hetero aggr='sum')
DST_EDGE_TYPES = {
    'movie': (('user', 'rates', 'movie'),
              ('genre', 'rev_has_genre', 'movie'),
              ('director', 'directs', 'movie')),
    'user': (('movie', 'rev_rates', 'user'),),
    'genre': (('movie', 'has_genre', 'genre'),),
    'director': (('movie', 'rev_directs', 'director'),),
}


# --------------------------------------------------------------------------
# Row-packer: many tiny blocks -> one operand (fewer DMAs / VMEM buffers)
# --------------------------------------------------------------------------
class _RowPacker:
    """Row-stacks small [r, c] blocks into one 2-D operand.

    Every block starts at an 8-aligned (sublane-tile aligned) row offset and is
    zero-padded on trailing rows/cols; the layout dict maps
    name -> (row_offset, rows, cols) so the kernel slices the exact block back
    out with static indices at its point of use.
    """

    def __init__(self, dtype):
        self._dtype = dtype
        self._blocks = []          # list of (name, np.ndarray[r, c])
        self._off = 0
        self._layout = {}

    def add(self, name, arr):
        arr = np.asarray(arr, np.float32)
        if arr.ndim == 1:
            arr = arr[None, :]
        r, c = arr.shape
        self._layout[name] = (self._off, r, c)
        self._blocks.append((name, arr))
        self._off += ((r + 7) // 8) * 8          # next block 8-aligned

    def finish(self):
        width = max(a.shape[1] for _, a in self._blocks)
        buf = np.zeros((self._off, width), np.float32)
        for name, a in self._blocks:
            off, r, c = self._layout[name]
            buf[off:off + r, :c] = a
        return jnp.asarray(buf, self._dtype), dict(self._layout)


# --------------------------------------------------------------------------
# The single fused Pallas kernel
# --------------------------------------------------------------------------
def _make_kernel(a_lay, w_lay, c_lay, num_layers):
    """Fused forward: input proj -> num_layers hetero EdgeSAGE layers -> classifier."""

    def kernel(apack_ref, wpack_ref, cpack_ref, out_ref):
        def rd(ref, lay, name):
            off, r, c = lay[name]                 # static Python ints
            return ref[off:off + r, 0:c]

        def dot(a, b):
            # bf16 MXU inputs, f32 accumulation; stored activations stay f32.
            return jnp.dot(a.astype(jnp.bfloat16), b.astype(jnp.bfloat16),
                           preferred_element_type=jnp.float32)

        # --- input projections + embeddings (bias + gathered emb pre-summed)
        x = {
            'user': dot(rd(cpack_ref, c_lay, 'user_x'),
                        rd(wpack_ref, w_lay, 'user_w')) + rd(cpack_ref, c_lay, 'user_c'),
            'movie': dot(rd(cpack_ref, c_lay, 'movie_x'),
                         rd(wpack_ref, w_lay, 'movie_w')) + rd(cpack_ref, c_lay, 'movie_c'),
            'director': rd(cpack_ref, c_lay, 'director_x0'),
            'genre': rd(cpack_ref, c_lay, 'genre_x0'),
        }

        # --- hetero EdgeSAGEConv layers (to_hetero aggr='sum'), ReLU each layer
        for layer in range(num_layers):
            new_x = {}
            for dst, ets in DST_EDGE_TYPES.items():
                # mean-aggregated source features per incoming edge type
                aggs = [dot(rd(apack_ref, a_lay, f'A_{dst}_{i}'), x[et[0]])
                        for i, et in enumerate(ets)]
                # [agg_0 | ... | agg_{k-1} | x_dst] @ vstack(Wl_0..Wl_{k-1}, sum(Wr))
                stacked = jnp.concatenate(aggs + [x[dst]], axis=1)
                out = (dot(stacked, rd(wpack_ref, w_lay, f'W_{dst}_{layer}'))
                       + rd(cpack_ref, c_lay, f'E_{dst}_{layer}'))   # edge-attr consts
                new_x[dst] = jnp.maximum(out, 0.0)                   # relu (f32 VPU)
            x = new_x

        # --- classifier on edge_label_index pairs (gather folded into one-hots)
        u = dot(rd(apack_ref, a_lay, 'G_user'), x['user'])
        m = dot(rd(apack_ref, a_lay, 'G_movie'), x['movie'])
        hid = jnp.maximum(dot(u, rd(wpack_ref, w_lay, 'w1_u'))
                          + dot(m, rd(wpack_ref, w_lay, 'w1_m'))
                          + rd(cpack_ref, c_lay, 'b1'), 0.0)
        out_ref[...] = dot(hid, rd(wpack_ref, w_lay, 'w2')) + rd(cpack_ref, c_lay, 'b2')

    return kernel


# --------------------------------------------------------------------------
# One-time host-side preprocessing (cache per (params, graph))
# --------------------------------------------------------------------------
def preprocess(params, data, cfg):
    h = cfg['hidden_dim']
    P = lambda a: np.asarray(a, np.float32)
    n_nodes = {nt: int(data[nt + '_node_id'].shape[0]) for nt in NODE_TYPES}
    emb = {nt: P(params[nt + '_emb'])[np.asarray(data[nt + '_node_id'])]
           for nt in NODE_TYPES}

    # dense mean-aggregation structure per edge type (graph-time constants)
    A, Eagg, Dind = {}, {}, {}
    for et in EDGE_TYPES:
        src, _, dst = et
        ei = np.asarray(data['edge_index'][et])                       # [2, E]
        ea = P(data['edge_attr'][et])                                 # [E, edge_dim]
        onehot_dst = (ei[1][None, :] ==
                      np.arange(n_nodes[dst])[:, None]).astype(np.float32)
        deg = onehot_dst.sum(1, keepdims=True)
        s_mean = onehot_dst / np.maximum(deg, 1.0)
        onehot_src = (ei[0][None, :] ==
                      np.arange(n_nodes[src])[:, None]).astype(np.float32)
        A[et] = s_mean @ onehot_src.T                                 # [n_dst, n_src]
        Eagg[et] = s_mean @ ea                                        # [n_dst, edge_dim]
        Dind[et] = np.minimum(deg, 1.0)                               # [n_dst, 1]

    apk = _RowPacker(jnp.bfloat16)      # structure / selection matrices
    wpk = _RowPacker(jnp.bfloat16)      # all weights (input proj, conv, classifier)
    cpk = _RowPacker(jnp.float32)       # f32 additive constants + raw features

    cpk.add('user_x', data['user_x'])
    cpk.add('movie_x', data['movie_x'])
    cpk.add('user_c', P(params['user_lin'][1]) + emb['user'])
    cpk.add('movie_c', P(params['movie_lin'][1]) + emb['movie'])
    cpk.add('director_x0', emb['director'])
    cpk.add('genre_x0', emb['genre'])

    wpk.add('user_w', params['user_lin'][0])
    wpk.add('movie_w', params['movie_lin'][0])

    for dst, ets in DST_EDGE_TYPES.items():
        for i, et in enumerate(ets):
            apk.add(f'A_{dst}_{i}', A[et])
        for l, conv in enumerate(params['convs']):
            # lin_l stacked per edge type + summed lin_r appended (one dot/layer)
            wl = [P(conv[et]['w_l']) for et in ets]
            wr = sum(P(conv[et]['w_r']) for et in ets)
            wpk.add(f'W_{dst}_{l}', np.concatenate(wl + [wr], axis=0))
            # edge-attr + bias constants, folded through lin_l (layer constant)
            econ = sum(
                Eagg[et] @ (P(conv[et]['w_e']) @ P(conv[et]['w_l']))
                + Dind[et] @ (P(conv[et]['b_e']) @ P(conv[et]['w_l']))
                + P(conv[et]['b_l'])
                for et in ets)
            cpk.add(f'E_{dst}_{l}', econ)

    eli = np.asarray(data['edge_label_index'])
    apk.add('G_user', (eli[0][:, None] ==
                       np.arange(n_nodes['user'])[None, :]).astype(np.float32))
    apk.add('G_movie', (eli[1][:, None] ==
                        np.arange(n_nodes['movie'])[None, :]).astype(np.float32))

    cls = params['classifier']
    wpk.add('w1_u', P(cls['w1'])[:h])
    wpk.add('w1_m', P(cls['w1'])[h:])
    wpk.add('w2', cls['w2'])
    cpk.add('b1', cls['b1'])
    cpk.add('b2', cls['b2'])

    apack, a_lay = apk.finish()
    wpack, w_lay = wpk.finish()
    cpack, c_lay = cpk.finish()
    return (apack, wpack, cpack), (a_lay, w_lay, c_lay)


def make_forward(layouts, num_layers, n_lbl, num_classes):
    a_lay, w_lay, c_lay = layouts
    kernel = _make_kernel(a_lay, w_lay, c_lay, num_layers)

    def forward(apack, wpack, cpack):
        # TODO(synk): for non-toy graphs, add a row-tiled BlockSpec grid over
        #             n_dst / n_lbl with dimension_semantics=("parallel",...)
        #             (v7x: 2 TCs, 64 MiB VMEM) and a 128-lane-padded output.
        return pl.pallas_call(
            kernel,
            out_shape=jax.ShapeDtypeStruct((n_lbl, num_classes), jnp.float32),
            in_specs=[VMEM_SPEC] * 3,
            out_specs=VMEM_SPEC,
            compiler_params=pltpu.CompilerParams(
                vmem_limit_bytes=32 * 1024 * 1024),
        )(apack, wpack, cpack)

    return forward


# --------------------------------------------------------------------------
# Parameter / toy-data construction (plain JAX glue)
# --------------------------------------------------------------------------
def _uniform(key, shape, bound):
    return jax.random.uniform(key, shape, F32, -bound, bound)


def init_linear(key, fan_in, fan_out, bias=True):
    kw, kb = jax.random.split(key)
    bound = 1.0 / float(np.sqrt(fan_in))
    w = _uniform(kw, (fan_in, fan_out), bound)            # pre-transposed [in, out]
    b = _uniform(kb, (1, fan_out), bound) if bias else None
    return w, b


def init_params(key, cfg, info):
    h, ed = cfg['hidden_dim'], cfg['edge_dim']
    keys = iter(jax.random.split(key, 64))
    params = {}
    params['genre_emb'] = jax.random.normal(next(keys), (info['num_genre_nodes'], h), F32)
    params['user_emb'] = jax.random.normal(next(keys), (info['num_user_nodes'], h), F32)
    params['director_emb'] = jax.random.normal(next(keys), (info['num_director_nodes'], h), F32)
    params['movie_emb'] = jax.random.normal(next(keys), (info['num_movie_nodes'], h), F32)
    params['user_lin'] = init_linear(next(keys), info['user_feature_dim'], h)
    params['movie_lin'] = init_linear(next(keys), info['movie_feature_dim'], h)

    convs = []
    for _ in range(cfg['num_layers']):        # to_hetero: one conv per edge type
        layer = {}
        for et in EDGE_TYPES:
            k1, k2, k3 = jax.random.split(next(keys), 3)
            w_l, b_l = init_linear(k1, h, h, bias=True)     # SAGE lin_l (bias)
            w_r, _ = init_linear(k2, h, h, bias=False)      # SAGE lin_r (no bias)
            w_e, b_e = init_linear(k3, ed, h, bias=True)    # edge_lin
            layer[et] = dict(w_l=w_l, b_l=b_l, w_r=w_r, w_e=w_e, b_e=b_e)
        convs.append(layer)
    params['convs'] = convs

    w1, b1 = init_linear(next(keys), 2 * h, h)
    w2, b2 = init_linear(next(keys), h, cfg['num_classes'])
    params['classifier'] = dict(w1=w1, b1=b1, w2=w2, b2=b2)
    return params


def make_data(key, info, cfg):
    keys = iter(jax.random.split(key, 32))
    n_nodes = {'user': info['num_user_nodes'], 'movie': info['num_movie_nodes'],
               'director': info['num_director_nodes'], 'genre': info['num_genre_nodes']}
    data = {}
    data['user_x'] = jax.random.normal(
        next(keys), (n_nodes['user'], info['user_feature_dim']), F32)
    data['movie_x'] = jax.random.normal(
        next(keys), (n_nodes['movie'], info['movie_feature_dim']), F32)
    for nt in NODE_TYPES:
        data[nt + '_node_id'] = jnp.arange(n_nodes[nt], dtype=jnp.int32)

    base_edges = {('user', 'rates', 'movie'): 24,
                  ('movie', 'has_genre', 'genre'): 18,
                  ('director', 'directs', 'movie'): 12}
    edge_index, edge_attr = {}, {}
    for et, cnt in base_edges.items():
        src, rel, dst = et
        ks, kd, ka = jax.random.split(next(keys), 3)
        s_idx = jax.random.randint(ks, (cnt,), 0, n_nodes[src], dtype=jnp.int32)
        d_idx = jax.random.randint(kd, (cnt,), 0, n_nodes[dst], dtype=jnp.int32)
        ea = jax.random.normal(ka, (cnt, cfg['edge_dim']), F32)
        edge_index[et] = jnp.stack([s_idx, d_idx])
        edge_attr[et] = ea
        rev = (dst, 'rev_' + rel, src)                  # ToUndirected-style reverse
        edge_index[rev] = jnp.stack([d_idx, s_idx])
        edge_attr[rev] = ea
    data['edge_index'] = edge_index
    data['edge_attr'] = edge_attr

    kl1, kl2 = jax.random.split(next(keys))
    data['edge_label_index'] = jnp.stack([
        jax.random.randint(kl1, (10,), 0, n_nodes['user'], dtype=jnp.int32),
        jax.random.randint(kl2, (10,), 0, n_nodes['movie'], dtype=jnp.int32)])
    return data


if __name__ == "__main__":
    cfg = dict(hidden_dim=32, edge_dim=4, num_layers=2, num_classes=7)
    info = dict(num_user_nodes=8, num_movie_nodes=12, num_director_nodes=6,
                num_genre_nodes=5, user_feature_dim=16, movie_feature_dim=20)
    key = jax.random.PRNGKey(0)
    kp, kd = jax.random.split(key)
    params = init_params(kp, cfg, info)
    data = make_data(kd, info, cfg)

    # one-time preprocessing (cache per (params, graph)); hot path = the kernel only
    (apack, wpack, cpack), layouts = preprocess(params, data, cfg)
    n_lbl = int(data['edge_label_index'].shape[1])

    run = jax.jit(make_forward(layouts, cfg['num_layers'], n_lbl, cfg['num_classes']))
    out = jax.block_until_ready(run(apack, wpack, cpack))
    assert out.shape == (n_lbl, cfg['num_classes'])
    assert bool(jnp.all(jnp.isfinite(out)))
    print("KERNEL_OK")
</pallas_src>

<mosaic_0001>
module attributes {stable_mosaic.version = 11 : i64} {
  func.func @kernel(%arg0: memref<104x12xbf16, #tpu.memory_space<vmem>>, %arg1: memref<776x32xbf16, #tpu.memory_space<vmem>>, %arg2: memref<160x32xf32, #tpu.memory_space<vmem>>, %arg3: memref<10x7xf32, #tpu.memory_space<vmem>>) attributes {dimension_semantics = [], scalar_prefetch = 0 : i64, scratch_operands = 0 : i64, tpu.core_type = #tpu.core_type<tc>} {
    %c0 = arith.constant 0 : index
    %c0_0 = arith.constant 0 : index
    %0 = vector.load %arg2[%c0, %c0_0] : memref<160x32xf32, #tpu.memory_space<vmem>>, vector<8x16xf32>
    %c0_1 = arith.constant 0 : index
    %c0_2 = arith.constant 0 : index
    %1 = vector.load %arg1[%c0_1, %c0_2] : memref<776x32xbf16, #tpu.memory_space<vmem>>, vector<16x32xbf16>
    %2 = arith.truncf %0 : vector<8x16xf32> to vector<8x16xbf16>
    %cst = arith.constant dense<0.000000e+00> : vector<8x32xf32>
    %3 = tpu.matmul %2, %1, %cst {dimension_numbers = #tpu.dot_dimension_numbers<[1], [0], [0], [1], [0, 0, 1, 1], [], []>} : vector<8x16xbf16>, vector<16x32xbf16>, vector<8x32xf32> -> vector<8x32xf32>
    %c24 = arith.constant 24 : index
    %c0_3 = arith.constant 0 : index
    %4 = vector.load %arg2[%c24, %c0_3] : memref<160x32xf32, #tpu.memory_space<vmem>>, vector<8x32xf32>
    %5 = arith.addf %3, %4 : vector<8x32xf32>
    %c8 = arith.constant 8 : index
    %c0_4 = arith.constant 0 : index
    %6 = vector.load %arg2[%c8, %c0_4] : memref<160x32xf32, #tpu.memory_space<vmem>>, vector<12x20xf32>
    %c16 = arith.constant 16 : index
    %c0_5 = arith.constant 0 : index
    %7 = vector.load %arg1[%c16, %c0_5] : memref<776x32xbf16, #tpu.memory_space<vmem>>, vector<20x32xbf16>
    %8 = arith.truncf %6 : vector<12x20xf32> to vector<12x20xbf16>
    %cst_6 = arith.constant dense<0.000000e+00> : vector<12x32xf32>
    %9 = tpu.matmul %8, %7, %cst_6 {dimension_numbers = #tpu.dot_dimension_numbers<[1], [0], [0], [1], [0, 0, 1, 1], [], []>} : vector<12x20xbf16>, vector<20x32xbf16>, vector<12x32xf32> -> vector<12x32xf32>
    %c32 = arith.constant 32 : index
    %c0_7 = arith.constant 0 : index
    %10 = vector.load %arg2[%c32, %c0_7] : memref<160x32xf32, #tpu.memory_space<vmem>>, vector<12x32xf32>
    %11 = arith.addf %9, %10 : vector<12x32xf32>
    %c48 = arith.constant 48 : index
    %c0_8 = arith.constant 0 : index
    %12 = vector.load %arg2[%c48, %c0_8] : memref<160x32xf32, #tpu.memory_space<vmem>>, vector<6x32xf32>
    %c56 = arith.constant 56 : index
    %c0_9 = arith.constant 0 : index
    %13 = vector.load %arg2[%c56, %c0_9] : memref<160x32xf32, #tpu.memory_space<vmem>>, vector<5x32xf32>
    %c0_10 = arith.constant 0 : index
    %c0_11 = arith.constant 0 : index
    %14 = vector.load %arg0[%c0_10, %c0_11] : memref<104x12xbf16, #tpu.memory_space<vmem>>, vector<12x8xbf16>
    %15 = arith.truncf %5 : vector<8x32xf32> to vector<8x32xbf16>
    %cst_12 = arith.constant dense<0.000000e+00> : vector<12x32xf32>
    %16 = tpu.matmul %14, %15, %cst_12 {dimension_numbers = #tpu.dot_dimension_numbers<[1], [0], [0], [1], [0, 0, 1, 1], [], []>} : vector<12x8xbf16>, vector<8x32xbf16>, vector<12x32xf32> -> vector<12x32xf32>
    %c16_13 = arith.constant 16 : index
    %c0_14 = arith.constant 0 : index
    %17 = vector.load %arg0[%c16_13, %c0_14] : memref<104x12xbf16, #tpu.memory_space<vmem>>, vector<12x5xbf16>
    %18 = arith.truncf %13 : vector<5x32xf32> to vector<5x32xbf16>
    %cst_15 = arith.constant dense<0.000000e+00> : vector<12x32xf32>
    %19 = tpu.matmul %17, %18, %cst_15 {dimension_numbers = #tpu.dot_dimension_numbers<[1], [0], [0], [1], [0, 0, 1, 1], [], []>} : vector<12x5xbf16>, vector<5x32xbf16>, vector<12x32xf32> -> vector<12x32xf32>
    %c32_16 = arith.constant 32 : index
    %c0_17 = arith.constant 0 : index
    %20 = vector.load %arg0[%c32_16, %c0_17] : memref<104x12xbf16, #tpu.memory_space<vmem>>, vector<12x6xbf16>
    %21 = arith.truncf %12 : vector<6x32xf32> to vector<6x32xbf16>
    %cst_18 = arith.constant dense<0.000000e+00> : vector<12x32xf32>
    %22 = tpu.matmul %20, %21, %cst_18 {dimension_numbers = #tpu.dot_dimension_numbers<[1], [0], [0], [1], [0, 0, 1, 1], [], []>} : vector<12x6xbf16>, vector<6x32xbf16>, vector<12x32xf32> -> vector<12x32xf32>
    %23 = tpu.concatenate %16, %19, %22, %11 in 1 : vector<12x32xf32>, vector<12x32xf32>, vector<12x32xf32>, vector<12x32xf32> -> vector<12x128xf32>
    %c40 = arith.constant 40 : index
    %c0_19 = arith.constant 0 : index
    %24 = vector.load %arg1[%c40, %c0_19] : memref<776x32xbf16, #tpu.memory_space<vmem>>, vector<128x32xbf16>
    %25 = arith.truncf %23 : vector<12x128xf32> to vector<12x128xbf16>
    %cst_20 = arith.constant dense<0.000000e+00> : vector<12x32xf32>
    %26 = tpu.matmul %25, %24, %cst_20 {dimension_numbers = #tpu.dot_dimension_numbers<[1], [0], [0], [1], [0, 0, 1, 1], [], []>} : vector<12x128xbf16>, vector<128x32xbf16>, vector<12x32xf32> -> vector<12x32xf32>
    %c64 = arith.constant 64 : index
    %c0_21 = arith.constant 0 : index
    %27 = vector.load %arg2[%c64, %c0_21] : memref<160x32xf32, #tpu.memory_space<vmem>>, vector<12x32xf32>
    %28 = arith.addf %26, %27 : vector<12x32xf32>
    %cst_22 = arith.constant 0.000000e+00 : f32
    %29 = vector.broadcast %cst_22 : f32 to vector<12x32xf32>
    %30 = arith.maximumf %28, %29 : vector<12x32xf32>
    %c48_23 = arith.constant 48 : index
    %c0_24 = arith.constant 0 : index
    %31 = vector.load %arg0[%c48_23, %c0_24] : memref<104x12xbf16, #tpu.memory_space<vmem>>, vector<8x12xbf16>
    %32 = arith.truncf %11 : vector<12x32xf32> to vector<12x32xbf16>
    %cst_25 = arith.constant dense<0.000000e+00> : vector<8x32xf32>
    %33 = tpu.matmul %31, %32, %cst_25 {dimension_numbers = #tpu.dot_dimension_numbers<[1], [0], [0], [1], [0, 0, 1, 1], [], []>} : vector<8x12xbf16>, vector<12x32xbf16>, vector<8x32xf32> -> vector<8x32xf32>
    %34 = tpu.concatenate %33, %5 in 1 : vector<8x32xf32>, vector<8x32xf32> -> vector<8x64xf32>
    %c296 = arith.constant 296 : index
    %c0_26 = arith.constant 0 : index
    %35 = vector.load %arg1[%c296, %c0_26] : memref<776x32xbf16, #tpu.memory_space<vmem>>, vector<64x32xbf16>
    %36 = arith.truncf %34 : vector<8x64xf32> to vector<8x64xbf16>
    %cst_27 = arith.constant dense<0.000000e+00> : vector<8x32xf32>
    %37 = tpu.matmul %36, %35, %cst_27 {dimension_numbers = #tpu.dot_dimension_numbers<[1], [0], [0], [1], [0, 0, 1, 1], [], []>} : vector<8x64xbf16>, vector<64x32xbf16>, vector<8x32xf32> -> vector<8x32xf32>
    %c96 = arith.constant 96 : index
    %c0_28 = arith.constant 0 : index
    %38 = vector.load %arg2[%c96, %c0_28] : memref<160x32xf32, #tpu.memory_space<vmem>>, vector<8x32xf32>
    %39 = arith.addf %37, %38 : vector<8x32xf32>
    %cst_29 = arith.constant 0.000000e+00 : f32
    %40 = vector.broadcast %cst_29 : f32 to vector<8x32xf32>
    %41 = arith.maximumf %39, %40 : vector<8x32xf32>
    %c56_30 = arith.constant 56 : index
    %c0_31 = arith.constant 0 : index
    %42 = vector.load %arg0[%c56_30, %c0_31] : memref<104x12xbf16, #tpu.memory_space<vmem>>, vector<5x12xbf16>
    %43 = arith.truncf %11 : vector<12x32xf32> to vector<12x32xbf16>
    %cst_32 = arith.constant dense<0.000000e+00> : vector<5x32xf32>
    %44 = tpu.matmul %42, %43, %cst_32 {dimension_numbers = #tpu.dot_dimension_numbers<[1], [0], [0], [1], [0, 0, 1, 1], [], []>} : vector<5x12xbf16>, vector<12x32xbf16>, vector<5x32xf32> -> vector<5x32xf32>
    %45 = tpu.concatenate %44, %13 in 1 : vector<5x32xf32>, vector<5x32xf32> -> vector<5x64xf32>
    %c424 = arith.constant 424 : index
    %c0_33 = arith.constant 0 : index
    %46 = vector.load %arg1[%c424, %c0_33] : memref<776x32xbf16, #tpu.memory_space<vmem>>, vector<64x32xbf16>
    %47 = arith.truncf %45 : vector<5x64xf32> to vector<5x64xbf16>
    %cst_34 = arith.constant dense<0.000000e+00> : vector<5x32xf32>
    %48 = tpu.matmul %47, %46, %cst_34 {dimension_numbers = #tpu.dot_dimension_numbers<[1], [0], [0], [1], [0, 0, 1, 1], [], []>} : vector<5x64xbf16>, vector<64x32xbf16>, vector<5x32xf32> -> vector<5x32xf32>
    %c112 = arith.constant 112 : index
    %c0_35 = arith.constant 0 : index
    %49 = vector.load %arg2[%c112, %c0_35] : memref<160x32xf32, #tpu.memory_space<vmem>>, vector<5x32xf32>
    %50 = arith.addf %48, %49 : vector<5x32xf32>
    %cst_36 = arith.constant 0.000000e+00 : f32
    %51 = vector.broadcast %cst_36 : f32 to vector<5x32xf32>
    %52 = arith.maximumf %50, %51 : vector<5x32xf32>
    %c64_37 = arith.constant 64 : index
    %c0_38 = arith.constant 0 : index
    %53 = vector.load %arg0[%c64_37, %c0_38] : memref<104x12xbf16, #tpu.memory_space<vmem>>, vector<6x12xbf16>
    %54 = arith.truncf %11 : vector<12x32xf32> to vector<12x32xbf16>
    %cst_39 = arith.constant dense<0.000000e+00> : vector<6x32xf32>
    %55 = tpu.matmul %53, %54, %cst_39 {dimension_numbers = #tpu.dot_dimension_numbers<[1], [0], [0], [1], [0, 0, 1, 1], [], []>} : vector<6x12xbf16>, vector<12x32xbf16>, vector<6x32xf32> -> vector<6x32xf32>
    %56 = tpu.concatenate %55, %12 in 1 : vector<6x32xf32>, vector<6x32xf32> -> vector<6x64xf32>
    %c552 = arith.constant 552 : index
    %c0_40 = arith.constant 0 : index
    %57 = vector.load %arg1[%c552, %c0_40] : memref<776x32xbf16, #tpu.memory_space<vmem>>, vector<64x32xbf16>
    %58 = arith.truncf %56 : vector<6x64xf32> to vector<6x64xbf16>
    %cst_41 = arith.constant dense<0.000000e+00> : vector<6x32xf32>
    %59 = tpu.matmul %58, %57, %cst_41 {dimension_numbers = #tpu.dot_dimension_numbers<[1], [0], [0], [1], [0, 0, 1, 1], [], []>} : vector<6x64xbf16>, vector<64x32xbf16>, vector<6x32xf32> -> vector<6x32xf32>
    %c128 = arith.constant 128 : index
    %c0_42 = arith.constant 0 : index
    %60 = vector.load %arg2[%c128, %c0_42] : memref<160x32xf32, #tpu.memory_space<vmem>>, vector<6x32xf32>
    %61 = arith.addf %59, %60 : vector<6x32xf32>
    %cst_43 = arith.constant 0.000000e+00 : f32
    %62 = vector.broadcast %cst_43 : f32 to vector<6x32xf32>
    %63 = arith.maximumf %61, %62 : vector<6x32xf32>
    %c0_44 = arith.constant 0 : index
    %c0_45 = arith.constant 0 : index
    %64 = vector.load %arg0[%c0_44, %c0_45] : memref<104x12xbf16, #tpu.memory_space<vmem>>, vector<12x8xbf16>
    %65 = arith.truncf %41 : vector<8x32xf32> to vector<8x32xbf16>
    %cst_46 = arith.constant dense<0.000000e+00> : vector<12x32xf32>
    %66 = tpu.matmul %64, %65, %cst_46 {dimension_numbers = #tpu.dot_dimension_numbers<[1], [0], [0], [1], [0, 0, 1, 1], [], []>} : vector<12x8xbf16>, vector<8x32xbf16>, vector<12x32xf32> -> vector<12x32xf32>
    %c16_47 = arith.constant 16 : index
    %c0_48 = arith.constant 0 : index
    %67 = vector.load %arg0[%c16_47, %c0_48] : memref<104x12xbf16, #tpu.memory_space<vmem>>, vector<12x5xbf16>
    %68 = arith.truncf %52 : vector<5x32xf32> to vector<5x32xbf16>
    %cst_49 = arith.constant dense<0.000000e+00> : vector<12x32xf32>
    %69 = tpu.matmul %67, %68, %cst_49 {dimension_numbers = #tpu.dot_dimension_numbers<[1], [0], [0], [1], [0, 0, 1, 1], [], []>} : vector<12x5xbf16>, vector<5x32xbf16>, vector<12x32xf32> -> vector<12x32xf32>
    %c32_50 = arith.constant 32 : index
    %c0_51 = arith.constant 0 : index
    %70 = vector.load %arg0[%c32_50, %c0_51] : memref<104x12xbf16, #tpu.memory_space<vmem>>, vector<12x6xbf16>
    %71 = arith.truncf %63 : vector<6x32xf32> to vector<6x32xbf16>
    %cst_52 = arith.constant dense<0.000000e+00> : vector<12x32xf32>
    %72 = tpu.matmul %70, %71, %cst_52 {dimension_numbers = #tpu.dot_dimension_numbers<[1], [0], [0], [1], [0, 0, 1, 1], [], []>} : vector<12x6xbf16>, vector<6x32xbf16>, vector<12x32xf32> -> vector<12x32xf32>
    %73 = tpu.concatenate %66, %69, %72, %30 in 1 : vector<12x32xf32>, vector<12x32xf32>, vector<12x32xf32>, vector<12x32xf32> -> vector<12x128xf32>
    %c168 = arith.constant 168 : index
    %c0_53 = arith.constant 0 : index
    %74 = vector.load %arg1[%c168, %c0_53] : memref<776x32xbf16, #tpu.memory_space<vmem>>, vector<128x32xbf16>
    %75 = arith.truncf %73 : vector<12x128xf32> to vector<12x128xbf16>
    %cst_54 = arith.constant dense<0.000000e+00> : vector<12x32xf32>
    %76 = tpu.matmul %75, %74, %cst_54 {dimension_numbers = #tpu.dot_dimension_numbers<[1], [0], [0], [1], [0, 0, 1, 1], [], []>} : vector<12x128xbf16>, vector<128x32xbf16>, vector<12x32xf32> -> vector<12x32xf32>
    %c80 = arith.constant 80 : index
    %c0_55 = arith.constant 0 : index
    %77 = vector.load %arg2[%c80, %c0_55] : memref<160x32xf32, #tpu.memory_space<vmem>>, vector<12x32xf32>
    %78 = arith.addf %76, %77 : vector<12x32xf32>
    %cst_56 = arith.constant 0.000000e+00 : f32
    %79 = vector.broadcast %cst_56 : f32 to vector<12x32xf32>
    %80 = arith.maximumf %78, %79 : vector<12x32xf32>
    %c48_57 = arith.constant 48 : index
    %c0_58 = arith.constant 0 : index
    %81 = vector.load %arg0[%c48_57, %c0_58] : memref<104x12xbf16, #tpu.memory_space<vmem>>, vector<8x12xbf16>
    %82 = arith.truncf %30 : vector<12x32xf32> to vector<12x32xbf16>
    %cst_59 = arith.constant dense<0.000000e+00> : vector<8x32xf32>
    %83 = tpu.matmul %81, %82, %cst_59 {dimension_numbers = #tpu.dot_dimension_numbers<[1], [0], [0], [1], [0, 0, 1, 1], [], []>} : vector<8x12xbf16>, vector<12x32xbf16>, vector<8x32xf32> -> vector<8x32xf32>
    %84 = tpu.concatenate %83, %41 in 1 : vector<8x32xf32>, vector<8x32xf32> -> vector<8x64xf32>
    %c360 = arith.constant 360 : index
    %c0_60 = arith.constant 0 : index
    %85 = vector.load %arg1[%c360, %c0_60] : memref<776x32xbf16, #tpu.memory_space<vmem>>, vector<64x32xbf16>
    %86 = arith.truncf %84 : vector<8x64xf32> to vector<8x64xbf16>
    %cst_61 = arith.constant dense<0.000000e+00> : vector<8x32xf32>
    %87 = tpu.matmul %86, %85, %cst_61 {dimension_numbers = #tpu.dot_dimension_numbers<[1], [0], [0], [1], [0, 0, 1, 1], [], []>} : vector<8x64xbf16>, vector<64x32xbf16>, vector<8x32xf32> -> vector<8x32xf32>
    %c104 = arith.constant 104 : index
    %c0_62 = arith.constant 0 : index
    %88 = vector.load %arg2[%c104, %c0_62] : memref<160x32xf32, #tpu.memory_space<vmem>>, vector<8x32xf32>
    %89 = arith.addf %87, %88 : vector<8x32xf32>
    %cst_63 = arith.constant 0.000000e+00 : f32
    %90 = vector.broadcast %cst_63 : f32 to vector<8x32xf32>
    %91 = arith.maximumf %89, %90 : vector<8x32xf32>
    %c72 = arith.constant 72 : index
    %c0_64 = arith.constant 0 : index
    %92 = vector.load %arg0[%c72, %c0_64] : memref<104x12xbf16, #tpu.memory_space<vmem>>, vector<10x8xbf16>
    %93 = arith.truncf %91 : vector<8x32xf32> to vector<8x32xbf16>
    %cst_65 = arith.constant dense<0.000000e+00> : vector<10x32xf32>
    %94 = tpu.matmul %92, %93, %cst_65 {dimension_numbers = #tpu.dot_dimension_numbers<[1], [0], [0], [1], [0, 0, 1, 1], [], []>} : vector<10x8xbf16>, vector<8x32xbf16>, vector<10x32xf32> -> vector<10x32xf32>
    %c88 = arith.constant 88 : index
    %c0_66 = arith.constant 0 : index
    %95 = vector.load %arg0[%c88, %c0_66] : memref<104x12xbf16, #tpu.memory_space<vmem>>, vector<10x12xbf16>
    %96 = arith.truncf %80 : vector<12x32xf32> to vector<12x32xbf16>
    %cst_67 = arith.constant dense<0.000000e+00> : vector<10x32xf32>
    %97 = tpu.matmul %95, %96, %cst_67 {dimension_numbers = #tpu.dot_dimension_numbers<[1], [0], [0], [1], [0, 0, 1, 1], [], []>} : vector<10x12xbf16>, vector<12x32xbf16>, vector<10x32xf32> -> vector<10x32xf32>
    %c680 = arith.constant 680 : index
    %c0_68 = arith.constant 0 : index
    %98 = vector.load %arg1[%c680, %c0_68] : memref<776x32xbf16, #tpu.memory_space<vmem>>, vector<32x32xbf16>
    %99 = arith.truncf %94 : vector<10x32xf32> to vector<10x32xbf16>
    %cst_69 = arith.constant dense<0.000000e+00> : vector<10x32xf32>
    %100 = tpu.matmul %99, %98, %cst_69 {dimension_numbers = #tpu.dot_dimension_numbers<[1], [0], [0], [1], [0, 0, 1, 1], [], []>} : vector<10x32xbf16>, vector<32x32xbf16>, vector<10x32xf32> -> vector<10x32xf32>
    %c712 = arith.constant 712 : index
    %c0_70 = arith.constant 0 : index
    %101 = vector.load %arg1[%c712, %c0_70] : memref<776x32xbf16, #tpu.memory_space<vmem>>, vector<32x32xbf16>
    %102 = arith.truncf %97 : vector<10x32xf32> to vector<10x32xbf16>
    %cst_71 = arith.constant dense<0.000000e+00> : vector<10x32xf32>
    %103 = tpu.matmul %102, %101, %cst_71 {dimension_numbers = #tpu.dot_dimension_numbers<[1], [0], [0], [1], [0, 0, 1, 1], [], []>} : vector<10x32xbf16>, vector<32x32xbf16>, vector<10x32xf32> -> vector<10x32xf32>
    %104 = arith.addf %100, %103 : vector<10x32xf32>
    %c144 = arith.constant 144 : index
    %c0_72 = arith.constant 0 : index
    %105 = vector.load %arg2[%c144, %c0_72] : memref<160x32xf32, #tpu.memory_space<vmem>>, vector<1x32xf32>
    %106 = vector.broadcast %105 : vector<1x32xf32> to vector<10x32xf32>
    %107 = arith.addf %104, %106 : vector<10x32xf32>
    %cst_73 = arith.constant 0.000000e+00 : f32
    %108 = vector.broadcast %cst_73 : f32 to vector<10x32xf32>
    %109 = arith.maximumf %107, %108 : vector<10x32xf32>
    %c744 = arith.constant 744 : index
    %c0_74 = arith.constant 0 : index
    %110 = vector.load %arg1[%c744, %c0_74] : memref<776x32xbf16, #tpu.memory_space<vmem>>, vector<32x7xbf16>
    %111 = arith.truncf %109 : vector<10x32xf32> to vector<10x32xbf16>
    %cst_75 = arith.constant dense<0.000000e+00> : vector<10x7xf32>
    %112 = tpu.matmul %111, %110, %cst_75 {dimension_numbers = #tpu.dot_dimension_numbers<[1], [0], [0], [1], [0, 0, 1, 1], [], []>} : vector<10x32xbf16>, vector<32x7xbf16>, vector<10x7xf32> -> vector<10x7xf32>
    %c152 = arith.constant 152 : index
    %c0_76 = arith.constant 0 : index
    %113 = vector.load %arg2[%c152, %c0_76] : memref<160x32xf32, #tpu.memory_space<vmem>>, vector<1x7xf32>
    %114 = vector.broadcast %113 : vector<1x7xf32> to vector<10x7xf32>
    %115 = arith.addf %112, %114 : vector<10x7xf32>
    %c0_77 = arith.constant 0 : index
    %c0_78 = arith.constant 0 : index
    %116 = vector.load %arg3[%c0_77, %c0_78] : memref<10x7xf32, #tpu.memory_space<vmem>>, vector<10x7xf32>
    tpu.vector_store %arg3[%c0_77, %c0_78], %115 {strides = array<i32>} : memref<10x7xf32, #tpu.memory_space<vmem>>, vector<10x7xf32>,
    return
  }
}

</mosaic_0001>

<bundles_post_ra>
// kernel: forward.1
= control target key start
LH: loop header
LB: loop body
LE: loop exit
PB: predicated region body
PF: predicated region fallthrough
CT: control target
= control target key end

     0   :  { %vm64_vm0 = vcmask 1041408   ;;  %vm126_vm1 = vcmask 1042432   ;;  %v1212_v3 = vmov 65535   ;;  %vm26_vm2 = vcmask 130048   ;;  %s1213_s9 = smov 32   ;;  %s1214_s5 = smov 64   ;;  %s1537_s1 = inlined_call_operand.vmem [shape: bf16[776,32], index: 1, kind: input, shape index: {}]   ;;  %s1538_s2 = inlined_call_operand.vmem [shape: f32[160,32], index: 2, kind: input, shape index: {}]   ;;  %s1539_s0 = inlined_call_operand.vmem [shape: bf16[104,12], index: 0, kind: input, shape index: {}]   ;;  %s1540_s3 = inlined_call_operand.vmem [shape: f32[10,7], index: 3, kind: output, shape index: {}]  }
   0x1   :  { %v1131_v0 = vld [vmem:[%s1537_s1] sm:$0xff]  ;;  %v47_v2 = vld [vmem:[%s1537_s1 + $0x10] sm:$0x3]  ;;  %v127_v4 = vsel %vm64_vm0, 4294967295, %v1212_v3  ;;  %v83_v7 = vld [vmem:[%s1538_s2 + $0x38] sm:$0x1f] }
   0x2   :  { %v15_v1 = vld [vmem:[%s1538_s2] sm:$0xff]  ;;  %v56_v6 = vunpack.c.l.b16 %v47_v2  ;;  %v1250_v8 = vsel %vm126_vm1, %v127_v4, 0  ;;  %37 = vmatpush.bf16.msra.mxu0 %v1131_v0  ;;  %v116_v9 = vpack.c.bf16 %v83_v7, %v83_v7  ;;  %v947_v10 = vld [vmem:[%s1539_s0 + $0x8] sm:$0xf]  ;;  %v1134_v11 = vld [vmem:[%s1539_s0 + $0x8] sm:$0x30] }
   0x3   :  { %v18_v5 = vpack.c.bf16 %v15_v1, %v15_v1  ;;  %v82_v13 = vld [vmem:[%s1538_s2 + $0x30] sm:$0x3f]  ;;  %v1263_v17 = vor.u32 %v1134_v11, %v947_v10  ;;  %v1132_v18 = vld [vmem:[%s1537_s1 + $0x8] sm:$0xff]  ;;  %vm122_vm3 = vcmask 39936   ;;  %vm60_vm4 = vcmask 162816   ;;  %v1145_v28 = vld [vmem:[%s1537_s1 + $0x9c] sm:$0xff] }
   0x4   :  { %v58_v12 = vpack.c.b16 %v56_v6, %v56_v6  ;;  %v130_v14 = vand.u32 %v1250_v8, %v116_v9  ;;  %v148_v15 = vpack.c.bf16 %v82_v13, %v82_v13  ;;  %v43_v19 = vld [vmem:[%s1538_s2 + $0x8] sm:$0xff]  ;;  %v44_v20 = vld [vmem:[%s1538_s2 + $0x10] sm:$0xf]  ;;  %v1135_v24 = vld [vmem:[%s1539_s0 + $0x10] sm:$0x30]  ;;  %vm154_vm5 = vcmask 48128   ;;  %461 = vrot.lane.b32.xlu1 %v82_v13, %s1213_s9 }
   0x5   :  { %934 = vmatmul.msk.bf16.vlgmr.msra.gmra.mxu0 %vm26_vm2, %v18_v5  ;;  %v48_v22 = vpack.c.bf16 %v44_v20, %v43_v19  ;;  %v952_v23 = vld [vmem:[%s1539_s0 + $0x10] sm:$0xf]  ;;  %v1146_v27 = vld [vmem:[%s1537_s1 + $0xa4] sm:$0xff]  ;;  %v1144_v29 = vld [vmem:[%s1537_s1 + $0x94] sm:$0xff]  ;;  %vm96_vm6 = vcmask 1043456   ;;  %vm92_vm7 = vcmask 64512  }
   0x6   :  { %v66_v16 = vsel %vm64_vm0, %v58_v12, 0  ;;  %139 = vmatpush.bf16.msra.mxu3 %v130_v14  ;;  %v159_v21 = vsel %vm126_vm1, %v148_v15, 0  ;;  %v1283_v25 = vor.u32 %v1135_v24, %v952_v23  ;;  %v1147_v26 = vld [vmem:[%s1537_s1 + $0xac] sm:$0xff]  ;;  %v19_v30 = vld [vmem:[%s1538_s2 + $0x18] sm:$0xff]  ;;  %v942_v33 = vld [vmem:[%s1539_s0] sm:$0xf] }
   0x7   :  { %74 = vmatpush.bf16.msra.mxu1 %v66_v16  ;;  %168 = vmatpush.bf16.msrb.mxu0 %v159_v21  ;;  %v1133_v34 = vld [vmem:[%s1539_s0] sm:$0x30]  ;;  %v50_v42 = vld [vmem:[%s1538_s2 + $0x28] sm:$0xf]  ;;  %vm297_vm8 = vcmask 1045504   ;;  %vm293_vm9 = vcmask 97280  }
   0x8   :  { %v1311_v37 = vor.u32 %v1133_v34, %v942_v33  ;;  %v49_v41 = vld [vmem:[%s1538_s2 + $0x20] sm:$0xff]  ;;  %v1327_v51 = vld [vmem:[%s1539_s0 + $0x18] sm:$0xf]  ;;  %v370_v52 = vld [vmem:[%s1539_s0 + $0x1c] sm:$0x7]  ;;  %s1215_s6 = smov 96  }
   0x9   :  { %949 = vmatmul.msk.bf16.vlgmr.msra.gmra.mxu3 %vm122_vm3, %v1263_v17  ;;  %v1143_v56 = vld [vmem:[%s1537_s1 + $0x4c] sm:$0xff]  ;;  %v1142_v57 = vld [vmem:[%s1537_s1 + $0x44] sm:$0xff]  ;;  %v1141_v59 = vld [vmem:[%s1537_s1 + $0x3c] sm:$0xff]  ;;  %vm199_vm10 = vcmask 261120   ;;  %vm202_vm11 = vcmask 523264   ;;  %vm205_vm12 = vcmask 785408  }
   0xa   :  { %v1151_v58 = vld [vmem:[%s1537_s1 + $0xec] sm:$0xff]  ;;  %v1140_v60 = vld [vmem:[%s1537_s1 + $0x34] sm:$0xff]  ;;  %v1150_v62 = vld [vmem:[%s1537_s1 + $0xe4] sm:$0xff]  ;;  %vm922_vm13 = vcmask 56320   ;;  %vm924_vm14 = vcmask 50176  }
   0xb   :  { %75 = vmatpush.bf16.msra.mxu1 %v1132_v18  ;;  %v1139_v61 = vld [vmem:[%s1537_s1 + $0x2c] sm:$0xff]  ;;  %v1138_v63 = vld [vmem:[%s1537_s1 + $0x24] sm:$0xff]  ;;  %v1149_v0 = vld [vmem:[%s1537_s1 + $0xdc] sm:$0xff] }
   0xc   :  { %v1137_v1 = vld [vmem:[%s1537_s1 + $0x1c] sm:$0xff]  ;;  %v1148_v2 = vld [vmem:[%s1537_s1 + $0xd4] sm:$0xff] }
   0xd   :  { %v1136_v3 = vld [vmem:[%s1537_s1 + $0x14] sm:$0xff] }
   0xe   :  { %939 = vmatmul.msk.bf16.vlgmr.msra.gmra.mxu1 %vm60_vm4, %v48_v22 }
   0xf   :  { %360 = vmatpush.bf16.msrb.mxu1 %v1147_v26 }
  0x13   :  { %361 = vmatpush.bf16.msrb.mxu1 %v1146_v27 }
  0x15   :  { %954 = vmatmul.msk.bf16.vlgmr.msrb.gmra.mxu0 %vm154_vm5, %v1283_v25 }
  0x17   :  { %362 = vmatpush.bf16.msrb.mxu1 %v1145_v28 }
  0x1b   :  { %363 = vmatpush.bf16.msrb.mxu1 %v1144_v29 }
  0x76   :  { %v1373_v4 = vpop.permute.xlu1 %461 }
  0x82   :  { %v39_v31 = vpop.f32.mrf.mxu0 }
  0x83   :  { %v40_v32 = vadd.f32 %v39_v31, %v19_v30 }
  0x85   :  { %v86_v35 = vpack.c.bf16 %v40_v32, %v40_v32  ;;  %315 = vrot.lane.b32.xlu0 %v40_v32, %s1213_s9 }
  0x87   :  { %v98_v36 = vsel %vm96_vm6, %v86_v35, 0 }
  0x88   :  { %107 = vmatpush.bf16.msra.mxu2 %v98_v36  ;;  %v443_v36 = vld [vmem:[%s1539_s0 + $0x20] sm:$0x7] }
  0x8a   :  { %v41_v39 = vpop.f32.mrf.mxu0 }
  0x8b   :  { %v77_v38 = vpop.f32.mrf.mxu1  ;;  %944 = vmatmul.msk.bf16.vlgmr.msra.gmra.mxu2 %vm92_vm7, %v1311_v37  ;;  %v1154_v39 = vld [vmem:[%s1537_s1 + $0x124] sm:$0xff] }
  0x8c   :  { %v141_v40 = vpop.f32.mrf.mxu3  ;;  %v78_v45 = vadd.f32 %v77_v38, %v49_v41  ;;  %275 = vmatpush.bf16.msrb.mxu2 %v1143_v56  ;;  %v1155_v38 = vld [vmem:[%s1537_s1 + $0x12c] sm:$0xff]  ;;  %v1152_v41 = vld [vmem:[%s1537_s1 + $0x114] sm:$0xff] }
  0x8d   :  { %388 = vrot.lane.b32.xlu0 %v83_v7, %s1213_s9 }
  0x90   :  { %276 = vmatpush.bf16.msrb.mxu2 %v1142_v57  ;;  %v226_v57 = vld [vmem:[%s1538_s2 + $0x48] sm:$0xf] }
  0x92   :  { %v170_v44 = vpop.f32.mrf.mxu0 }
  0x93   :  { %v79_v43 = vpop.f32.mrf.mxu1 }
  0x94   :  { %v80_v46 = vadd.f32 %v79_v43, %v50_v42  ;;  %v143_v47 = vpop.f32.mrf.mxu3  ;;  %277 = vmatpush.bf16.msrb.mxu2 %v1141_v59  ;;  %v328_v42 = vld [vmem:[%s1538_s2 + $0x60] sm:$0xff]  ;;  %v401_v43 = vld [vmem:[%s1538_s2 + $0x70] sm:$0x1f] }
  0x95   :  { %v1180_v49 = vpack.i.bf16 %v143_v47, %v141_v40  ;;  %v1153_v40 = vld [vmem:[%s1537_s1 + $0x11c] sm:$0xff] }
  0x96   :  { %v292_v48 = vpack.c.bf16 %v80_v46, %v78_v45  ;;  %v1190_v55 = vpack.i.bf16 %v80_v46, %v78_v45 }
  0x97   :  { %1181 = vrot.lane.b32.xlu1 %v1180_v49, %s1213_s9 }
  0x98   :  { %v299_v50 = vsel %vm297_vm8, %v292_v48, 0  ;;  %278 = vmatpush.bf16.msrb.mxu2 %v1140_v60 }
  0x99   :  { %308 = vmatpush.bf16.msrb.mxu3 %v299_v50  ;;  %381 = vmatpush.bf16.msra.mxu0 %v299_v50 }
  0x9a   :  { %454 = vmatpush.bf16.msra.mxu1 %v299_v50  ;;  %v172_v53 = vpop.f32.mrf.mxu0 }
  0x9b   :  { %v1185_v54 = vpack.i.bf16 %v172_v53, %v170_v44 }
  0x9c   :  { %987 = vmatmul.msk.bf16.vlgmr.msrb.gmra.mxu3 %vm293_vm9, %v1327_v51  ;;  %1005 = vmatmul.msk.bf16.vlgmr.msra.gmra.mxu0 %vm293_vm9, %v370_v52 }
  0x9d   :  { %1186 = vrot.lane.b32.xlu2 %v1185_v54, %s1214_s5  ;;  %433 = vmatpush.bf16.msra.mxu3 %v1151_v58  ;;  %v225_v54 = vld [vmem:[%s1538_s2 + $0x40] sm:$0xff] }
  0x9e   :  { %279 = vmatpush.bf16.msrb.mxu2 %v1139_v61  ;;  %506 = vmatpush.bf16.msrb.mxu0 %v1155_v38  ;;  %v1158_v38 = vld [vmem:[%s1537_s1 + $0x64] sm:$0xff] }
  0xa1   :  { %434 = vmatpush.bf16.msra.mxu3 %v1150_v62 }
  0xa2   :  { %280 = vmatpush.bf16.msrb.mxu2 %v1138_v63  ;;  %507 = vmatpush.bf16.msrb.mxu0 %v1154_v39 }
  0xa5   :  { %1191 = vrot.lane.b32.xlu2 %v1190_v55, %s1215_s6  ;;  %435 = vmatpush.bf16.msra.mxu3 %v1149_v0 }
  0xa6   :  { %281 = vmatpush.bf16.msrb.mxu2 %v1137_v1  ;;  %508 = vmatpush.bf16.msrb.mxu0 %v1153_v40  ;;  %v1157_v40 = vld [vmem:[%s1537_s1 + $0x5c] sm:$0xff] }
  0xa9   :  { %436 = vmatpush.bf16.msra.mxu3 %v1148_v2 }
  0xaa   :  { %282 = vmatpush.bf16.msrb.mxu2 %v1136_v3  ;;  %509 = vmatpush.bf16.msrb.mxu0 %v1152_v41 }
  0xf7   :  { %v1187_v5 = vpop.permute.xlu2 %1186  ;;  %v316_v7 = vpop.permute.xlu0 %315 }
  0xf8   :  { %v1188_v11 = vunpack.i.l.bf16 %v1187_v5  ;;  %v1189_v14 = vunpack.i.h.bf16 %v1187_v5 }
  0xff   :  { %v1192_v15 = vpop.permute.xlu2 %1191  ;;  %v389_v19 = vpop.permute.xlu0 %388 }
 0x100   :  { %v1194_v20 = vunpack.i.h.bf16 %v1192_v15  ;;  %v1193_v21 = vunpack.i.l.bf16 %v1192_v15 }
 0x109   :  { %v1182_v6 = vpop.permute.xlu1 %1181 }
 0x10a   :  { %v1183_v10 = vunpack.i.l.bf16 %v1182_v6  ;;  %v1184_v12 = vunpack.i.h.bf16 %v1182_v6 }
 0x10e   :  { %v109_v9 = vpop.f32.mrf.mxu2 }
 0x10f   :  { %v200_v13 = vsel %vm199_vm10, %v109_v9, %v1183_v10  ;;  %v474_v9 = vld [vmem:[%s1538_s2 + $0x80] sm:$0x3f] }
 0x110   :  { %v203_v16 = vsel %vm202_vm11, %v200_v13, %v1188_v11 }
 0x111   :  { %v206_v27 = vsel %vm205_vm12, %v203_v16, %v1193_v21  ;;  %v1164_v21 = vld [vmem:[%s1537_s1 + $0xb4] sm:$0xff] }
 0x116   :  { %v111_v18 = vpop.f32.mrf.mxu2 }
 0x117   :  { %v201_v22 = vsel %vm199_vm10, %v111_v18, %v1184_v12  ;;  %v1166_v18 = vld [vmem:[%s1537_s1 + $0xc4] sm:$0xff] }
 0x118   :  { %v204_v23 = vsel %vm202_vm11, %v201_v22, %v1189_v14 }
 0x119   :  { %v383_v24 = vpop.f32.mrf.mxu0  ;;  %v207_v28 = vsel %vm205_vm12, %v204_v23, %v1194_v20  ;;  %v1165_v20 = vld [vmem:[%s1537_s1 + $0xbc] sm:$0xff]  ;;  %v1163_v23 = vld [vmem:[%s1537_s1 + $0x8c] sm:$0xff] }
 0x11a   :  { %v391_v26 = vsel %vm199_vm10, %v383_v24, %v389_v19  ;;  %v224_v30 = vpack.c.bf16 %v207_v28, %v206_v27  ;;  %667 = vmatpush.bf16.msra.mxu0 %v1163_v23  ;;  %v1162_v24 = vld [vmem:[%s1537_s1 + $0x84] sm:$0xff]  ;;  %v1174_v23 = vld [vmem:[%s1537_s1 + $0x174] sm:$0xff] }
 0x11b   :  { %v400_v29 = vpack.c.bf16 %v391_v26, %v391_v26  ;;  %v1161_v26 = vld [vmem:[%s1537_s1 + $0x7c] sm:$0xff] }
 0x11c   :  { %283 = vmatmul.bf16.vlgmr.msrb.gmra.mxu2 %v224_v30  ;;  %v1160_v30 = vld [vmem:[%s1537_s1 + $0x74] sm:$0xff] }
 0x11d   :  { %1022 = vmatmul.msk.bf16.vlgmr.msra.gmra.mxu3 %vm202_vm11, %v400_v29 }
 0x11e   :  { %668 = vmatpush.bf16.msra.mxu0 %v1162_v24 }
 0x11f   :  { %v310_v31 = vpop.f32.mrf.mxu3 }
 0x120   :  { %v318_v32 = vsel %vm199_vm10, %v310_v31, %v316_v7 }
 0x121   :  { %v327_v33 = vpack.c.bf16 %v318_v32, %v318_v32  ;;  %v385_v34 = vpop.f32.mrf.mxu0 }
 0x122   :  { %669 = vmatpush.bf16.msra.mxu0 %v1161_v26 }
 0x123   :  { %1004 = vmatmul.msk.bf16.vlgmr.msrb.gmra.mxu1 %vm202_vm11, %v327_v33  ;;  %v1159_v33 = vld [vmem:[%s1537_s1 + $0x6c] sm:$0xff] }
 0x126   :  { %670 = vmatpush.bf16.msra.mxu0 %v1160_v30 }
 0x127   :  { %v312_v35 = vpop.f32.mrf.mxu3 }
 0x12a   :  { %671 = vmatpush.bf16.msra.mxu0 %v1159_v33 }
 0x12e   :  { %672 = vmatpush.bf16.msra.mxu0 %v1158_v38  ;;  %v1211_v38 = vld [vmem:[%s1538_s2 + $0x98] ss:$0 sm:$0xff] }
 0x132   :  { %673 = vmatpush.bf16.msra.mxu0 %v1157_v40 }
 0x133   :  { %1023 = vmatmul.msk.bf16.vlgmr.msra.gmra.mxu1 %vm293_vm9, %v443_v36 }
 0x19f   :  { %v284_v48 = vpop.f32.mrf.mxu2 }
 0x1a0   :  { %v365_v44 = vpop.f32.mrf.mxu1  ;;  %v438_v45 = vpop.f32.mrf.mxu3  ;;  %v285_v58 = vadd.f32 %v284_v48, %v225_v54 }
 0x1a1   :  { %v366_v46 = vadd.f32 %v365_v44, %v328_v42  ;;  %v439_v47 = vadd.f32 %v438_v45, %v401_v43  ;;  %v1156_v43 = vld [vmem:[%s1537_s1 + $0x54] sm:$0xff] }
 0x1a2   :  { %v289_v63 = vmax.f32 %v285_v58, 0.0  ;;  %674 = vmatpush.bf16.msra.mxu0 %v1156_v43 }
 0x1a3   :  { %v369_v49 = vmax.f32 %v366_v46, 0.0  ;;  %v442_v50 = vmax.f32 %v439_v47, 0.0 }
 0x1a5   :  { %v516_v52 = vpack.c.bf16 %v369_v49, %v369_v49  ;;  %v534_v53 = vpack.c.bf16 %v442_v50, %v442_v50 }
 0x1a7   :  { %v536_v55 = vand.u32 %v534_v53, %v1250_v8  ;;  %v518_v56 = vsel %vm96_vm6, %v516_v52, 0  ;;  %v286_v61 = vpop.f32.mrf.mxu2  ;;  %v714_v53 = vld [vmem:[%s1538_s2 + $0x68] sm:$0xff] }
 0x1a8   :  { %v367_v59 = vpop.f32.mrf.mxu1  ;;  %527 = vmatpush.bf16.msra.mxu2 %v518_v56  ;;  %v440_v60 = vpop.f32.mrf.mxu3  ;;  %v287_v62 = vadd.f32 %v286_v61, %v226_v57 }
 0x1a9   :  { %545 = vmatpush.bf16.msrb.mxu3 %v536_v55 }
 0x1aa   :  { %v290_v0 = vmax.f32 %v287_v62, 0.0 }
 0x1ab   :  { %1041 = vmatmul.msk.bf16.vlgmr.msra.gmra.mxu2 %vm92_vm7, %v1311_v37 }
 0x1ac   :  { %1042 = vmatmul.msk.bf16.vlgmr.msrb.gmra.mxu3 %vm122_vm3, %v1263_v17  ;;  %v1205_v8 = vpack.i.bf16 %v290_v0, %v289_v63  ;;  %v683_v1 = vpack.c.bf16 %v290_v0, %v289_v63  ;;  %v1167_v17 = vld [vmem:[%s1537_s1 + $0xcc] sm:$0xff]  ;;  %v1096_v63 = vld [vmem:[%s1539_s0 + $0x24] sm:$0xf]  ;;  %v1168_v0 = vld [vmem:[%s1539_s0 + $0x24] sm:$0x10] }
 0x1ad   :  { %746 = vmatpush.bf16.msra.mxu3 %v1167_v17 }
 0x1ae   :  { %1206 = vrot.lane.b32.xlu2 %v1205_v8, %s1215_s6  ;;  %v685_v3 = vsel %vm297_vm8, %v683_v1, 0  ;;  %v1097_v8 = vor.u32 %v1168_v0, %v1096_v63 }
 0x1af   :  { %694 = vmatpush.bf16.msrb.mxu2 %v685_v3  ;;  %v618_v3 = vld [vmem:[%s1538_s2 + $0x58] sm:$0xf] }
 0x1b0   :  { %v456_v2 = vpop.f32.mrf.mxu1 }
 0x1b1   :  { %v464_v5 = vsel %vm199_vm10, %v456_v2, %v1373_v4  ;;  %747 = vmatpush.bf16.msra.mxu3 %v1166_v18  ;;  %v617_v2 = vld [vmem:[%s1538_s2 + $0x50] sm:$0xff] }
 0x1b2   :  { %v473_v6 = vpack.c.bf16 %v464_v5, %v464_v5 }
 0x1b4   :  { %1040 = vmatmul.msk.bf16.vlgmr.msrb.gmra.mxu0 %vm202_vm11, %v473_v6 }
 0x1b5   :  { %748 = vmatpush.bf16.msra.mxu3 %v1165_v20 }
 0x1b8   :  { %v458_v37 = vpop.f32.mrf.mxu1 }
 0x1b9   :  { %749 = vmatpush.bf16.msra.mxu3 %v1164_v21 }
 0x1bb   :  { %1076 = vmatmul.msk.bf16.vlgmr.msrb.gmra.mxu2 %vm293_vm9, %v1327_v51 }
 0x208   :  { %v1207_v44 = vpop.permute.xlu2 %1206 }
 0x209   :  { %v1209_v48 = vunpack.i.h.bf16 %v1207_v44 }
 0x22e   :  { %v529_v51 = vpop.f32.mrf.mxu2 }
 0x22f   :  { %v547_v7 = vpop.f32.mrf.mxu3 }
 0x231   :  { %v511_v10 = vpop.f32.mrf.mxu0 }
 0x232   :  { %v512_v4 = vadd.f32 %v511_v10, %v474_v9  ;;  %v1101_v9 = vld [vmem:[%s1539_s0 + $0x2c] sm:$0xf]  ;;  %v1169_v10 = vld [vmem:[%s1539_s0 + $0x2c] sm:$0x10] }
 0x234   :  { %v515_v11 = vmax.f32 %v512_v4, 0.0 }
 0x236   :  { %v552_v12 = vpack.c.bf16 %v515_v11, %v515_v11  ;;  %v531_v19 = vpop.f32.mrf.mxu2 }
 0x237   :  { %v549_v13 = vpop.f32.mrf.mxu3 }
 0x238   :  { %v1195_v14 = vpack.i.bf16 %v549_v13, %v547_v7  ;;  %v554_v15 = vsel %vm126_vm1, %v552_v12, 0  ;;  %v1102_v12 = vor.u32 %v1169_v10, %v1101_v9 }
 0x239   :  { %v513_v16 = vpop.f32.mrf.mxu0  ;;  %563 = vmatpush.bf16.msrb.mxu1 %v554_v15  ;;  %v1170_v15 = vld [vmem:[%s1537_s1 + $0x154] sm:$0xff] }
 0x23a   :  { %1196 = vrot.lane.b32.xlu0 %v1195_v14, %s1213_s9  ;;  %v1171_v14 = vld [vmem:[%s1537_s1 + $0x15c] sm:$0xff] }
 0x23c   :  { %1043 = vmatmul.msk.bf16.vlgmr.msrb.gmra.mxu1 %vm154_vm5, %v1283_v25 }
 0x23e   :  { %v696_v22 = vpop.f32.mrf.mxu2 }
 0x242   :  { %701 = vrot.lane.b32.xlu0 %v369_v49, %s1213_s9  ;;  %v1208_v49 = vunpack.i.l.bf16 %v1207_v44 }
 0x246   :  { %v698_v25 = vpop.f32.mrf.mxu2 }
 0x247   :  { %v1175_v25 = vld [vmem:[%s1537_s1 + $0x17c] sm:$0xff] }
 0x248   :  { %914 = vmatpush.bf16.msrb.mxu0 %v1175_v25 }
 0x24c   :  { %915 = vmatpush.bf16.msrb.mxu0 %v1174_v23 }
 0x2ac   :  { %v1197_v27 = vpop.permute.xlu0 %1196 }
 0x2ad   :  { %v1199_v28 = vunpack.i.h.bf16 %v1197_v27  ;;  %v1198_v29 = vunpack.i.l.bf16 %v1197_v27 }
 0x2af   :  { %v594_v31 = vsel %vm199_vm10, %v529_v51, %v1198_v29  ;;  %v595_v32 = vsel %vm199_vm10, %v531_v19, %v1199_v28  ;;  %v1173_v51 = vld [vmem:[%s1537_s1 + $0x16c] sm:$0xff]  ;;  %v1172_v19 = vld [vmem:[%s1537_s1 + $0x164] sm:$0xff] }
 0x2b0   :  { %843 = vmatpush.bf16.msrb.mxu3 %v1173_v51  ;;  %v1210_v28 = vld [vmem:[%s1538_s2 + $0x90] ss:$0 sm:$0xff] }
 0x2b4   :  { %v702_v34 = vpop.permute.xlu0 %701  ;;  %844 = vmatpush.bf16.msrb.mxu3 %v1172_v19 }
 0x2b5   :  { %v704_v35 = vsel %vm199_vm10, %v696_v22, %v702_v34 }
 0x2b6   :  { %v713_v36 = vpack.c.bf16 %v704_v35, %v704_v35 }
 0x2b8   :  { %1093 = vmatmul.msk.bf16.vlgmr.msra.gmra.mxu3 %vm202_vm11, %v713_v36 }
 0x2b9   :  { %v565_v39 = vpop.f32.mrf.mxu1 }
 0x2c1   :  { %v567_v41 = vpop.f32.mrf.mxu1 }
 0x2c2   :  { %v1200_v42 = vpack.i.bf16 %v567_v41, %v565_v39 }
 0x2c4   :  { %1201 = vrot.lane.b32.xlu1 %v1200_v42, %s1214_s5 }
 0x336   :  { %v1202_v45 = vpop.permute.xlu1 %1201 }
 0x337   :  { %v1204_v46 = vunpack.i.h.bf16 %v1202_v45  ;;  %v1203_v47 = vunpack.i.l.bf16 %v1202_v45 }
 0x339   :  { %v596_v50 = vsel %vm202_vm11, %v594_v31, %v1203_v47  ;;  %v597_v52 = vsel %vm202_vm11, %v595_v32, %v1204_v46 }
 0x33a   :  { %v598_v54 = vsel %vm205_vm12, %v596_v50, %v1208_v49  ;;  %v599_v55 = vsel %vm205_vm12, %v597_v52, %v1209_v48 }
 0x33b   :  { %v751_v56 = vpop.f32.mrf.mxu3  ;;  %v616_v57 = vpack.c.bf16 %v599_v55, %v598_v54 }
 0x33c   :  { %v752_v58 = vadd.f32 %v751_v56, %v714_v53 }
 0x33d   :  { %675 = vmatmul.bf16.vlgmr.msra.gmra.mxu0 %v616_v57 }
 0x33e   :  { %v755_v59 = vmax.f32 %v752_v58, 0.0 }
 0x340   :  { %v758_v60 = vpack.c.bf16 %v755_v59, %v755_v59 }
 0x342   :  { %v768_v61 = vsel %vm96_vm6, %v758_v60, 0 }
 0x343   :  { %v753_v62 = vpop.f32.mrf.mxu3  ;;  %777 = vmatpush.bf16.msra.mxu1 %v768_v61 }
 0x346   :  { %1098 = vmatmul.msk.bf16.vlgmr.msra.gmra.mxu1 %vm92_vm7, %v1097_v8 }
 0x347   :  { %872 = vmatpush.bf16.msrb.mxu1 %v1171_v14 }
 0x34b   :  { %873 = vmatpush.bf16.msrb.mxu1 %v1170_v15 }
 0x3ba   :  { %v676_v1 = vpop.f32.mrf.mxu0 }
 0x3bb   :  { %v677_v5 = vadd.f32 %v676_v1, %v617_v2 }
 0x3bd   :  { %v681_v17 = vmax.f32 %v677_v5, 0.0 }
 0x3c2   :  { %v678_v6 = vpop.f32.mrf.mxu0 }
 0x3c3   :  { %v679_v37 = vadd.f32 %v678_v6, %v618_v3  ;;  %v779_v13 = vpop.f32.mrf.mxu1 }
 0x3c5   :  { %v682_v7 = vmax.f32 %v679_v37, 0.0 }
 0x3c7   :  { %v786_v4 = vpack.c.bf16 %v682_v7, %v681_v17 }
 0x3c9   :  { %v796_v11 = vsel %vm297_vm8, %v786_v4, 0 }
 0x3ca   :  { %805 = vmatpush.bf16.msra.mxu2 %v796_v11 }
 0x3cb   :  { %v781_v16 = vpop.f32.mrf.mxu1 }
 0x3cc   :  { %v816_v18 = vpack.c.bf16 %v781_v16, %v779_v13 }
 0x3cd   :  { %1103 = vmatmul.msk.bf16.vlgmr.msra.gmra.mxu2 %vm293_vm9, %v1102_v12 }
 0x3ce   :  { %1121 = vmatmul.msk.bf16.vlgmr.msrb.gmra.mxu1 %vm199_vm10, %v816_v18 }
 0x44b   :  { %v875_v24 = vpop.f32.mrf.mxu1 }
 0x450   :  { %v807_v20 = vpop.f32.mrf.mxu2 }
 0x453   :  { %v877_v29 = vpop.f32.mrf.mxu1 }
 0x458   :  { %v809_v21 = vpop.f32.mrf.mxu2 }
 0x459   :  { %v821_v22 = vpack.c.bf16 %v809_v21, %v807_v20 }
 0x45b   :  { %1112 = vmatmul.msk.bf16.vlgmr.msrb.gmra.mxu3 %vm199_vm10, %v821_v22 }
 0x4de   :  { %v846_v26 = vpop.f32.mrf.mxu3 }
 0x4df   :  { %v876_v27 = vadd.f32 %v875_v24, %v846_v26 }
 0x4e1   :  { %v882_v31 = vadd.f32 %v1210_v28, %v876_v27 }
 0x4e3   :  { %v884_v34 = vmax.f32 %v882_v31, 0.0 }
 0x4e6   :  { %v848_v30 = vpop.f32.mrf.mxu3 }
 0x4e7   :  { %v878_v32 = vadd.f32 %v877_v29, %v848_v30 }
 0x4e9   :  { %v883_v33 = vadd.f32 %v1210_v28, %v878_v32 }
 0x4eb   :  { %v885_v35 = vmax.f32 %v883_v33, 0.0 }
 0x4ed   :  { %v890_v36 = vpack.c.bf16 %v885_v35, %v884_v34 }
 0x4ef   :  { %1130 = vmatmul.msk.bf16.vlgmr.msrb.gmra.mxu0 %vm199_vm10, %v890_v36 }
 0x56c   :  { %v917_v39 = vpop.f32.mrf.mxu0 }
 0x56d   :  { %v918_v40 = vadd.f32 %v1211_v38, %v917_v39 }
 0x56f   :  { %923 = vst.msk [vmem:[%s1540_s3] sm:$0xff] %vm922_vm13, %v918_v40 }
 0x574   :  { %v919_v41 = vpop.f32.mrf.mxu0 }
 0x575   :  { %v920_v42 = vadd.f32 %v1211_v38, %v919_v41 }
 0x577   :  { %925 = vst.msk [vmem:[%s1540_s3 + $0x8] sm:$0x3] %vm924_vm14, %v920_v42 }

</bundles_post_ra>
